<compile_context>
chip_gen: v6e
topology: v6e:2x2x1
jax: 0.10.0
libtpu: 0.0.40
codegen_flags: <defaults>
</compile_context>

<pallas_src>
import jax
import jax.numpy as jnp
from jax.experimental import pallas as pl
from jax.experimental.pallas import tpu as pltpu


def _round_up(n, m):
    return ((n + m - 1) // m) * m


def _mlp_kernel(x_ref,
                w1_ref, b1_ref,
                w2_ref, b2_ref,
                w3_ref, b3_ref,
                w4_ref, b4_ref,
                o_ref):
    """Fused 4-layer MLP forward for one batch tile (weights VMEM-resident).

    Weights are bf16 (MXU-native), accumulation is f32, bias/ReLU are f32.
    """
    h = x_ref[...].astype(jnp.bfloat16)

    h = jnp.dot(h, w1_ref[...], preferred_element_type=jnp.float32) + b1_ref[...]
    h = jnp.maximum(h, 0.0).astype(jnp.bfloat16)

    h = jnp.dot(h, w2_ref[...], preferred_element_type=jnp.float32) + b2_ref[...]
    h = jnp.maximum(h, 0.0).astype(jnp.bfloat16)

    h = jnp.dot(h, w3_ref[...], preferred_element_type=jnp.float32) + b3_ref[...]
    h = jnp.maximum(h, 0.0).astype(jnp.bfloat16)

    out = jnp.dot(h, w4_ref[...], preferred_element_type=jnp.float32) + b4_ref[...]
    o_ref[...] = out.astype(o_ref.dtype)


def _choose_tile(batch, batch_tile):
    """Pick an MXU-friendly batch tile.

    - Tiny batches: one tile, 8-row (sublane) aligned.
    - Large batches: 256-row aligned (256x256 MXU on v6e/v7x), capped so the
      grid has >= 2 steps whenever possible (v7x megacore sharding).
    """
    if batch <= 256:
        return _round_up(batch, 8)
    tile = min(int(batch_tile), _round_up(batch, 256))
    tile = _round_up(tile, 256)
    if pl.cdiv(batch, tile) < 2:
        tile = max(256, _round_up(pl.cdiv(batch, 2), 256))
    return tile


def mlp_forward(x, params, *, batch_tile=2048):
    """x: [B, in_features] f32 (or bf16). params: [in,out] weights, [1,out] biases."""
    B, f_in = x.shape
    f_out = params["w4"].shape[1]

    # Weights to bf16 for MXU throughput; biases stay f32 (added post-matmul).
    flat_params = []
    for idx in (1, 2, 3, 4):
        flat_params.append(params[f"w{idx}"].astype(jnp.bfloat16))
        flat_params.append(params[f"b{idx}"].astype(jnp.float32))

    tile = _choose_tile(B, batch_tile)
    grid = (pl.cdiv(B, tile),)   # partial last block handled by Pallas (no pad/slice)

    in_specs = [pl.BlockSpec((tile, f_in), lambda i: (i, 0))]
    for arr in flat_params:
        # Grid-invariant operands: constant block index, full array per step.
        in_specs.append(pl.BlockSpec(arr.shape, lambda i: (0, 0)))

    return pl.pallas_call(
        _mlp_kernel,
        out_shape=jax.ShapeDtypeStruct((B, f_out), jnp.float32),
        grid_spec=pltpu.PrefetchScalarGridSpec(
            num_scalar_prefetch=0,
            grid=grid,
            in_specs=in_specs,
            out_specs=pl.BlockSpec((tile, f_out), lambda i: (i, 0)),
        ),
        compiler_params=pltpu.CompilerParams(
            dimension_semantics=("parallel",),   # megacore shards the batch axis
            vmem_limit_bytes=48 * 1024 * 1024,   # plenty for tile<=2048 working set
        ),
    )(x, *flat_params)


def init_params(key, in_features, out_features):
    """Deterministic init mimicking PyTorch nn.Linear default U(-1/sqrt(fan_in), +)."""
    dims = [(in_features, 256), (256, 512), (512, 256), (256, out_features)]
    params = {}
    for idx, (fi, fo) in enumerate(dims, start=1):
        key, kw, kb = jax.random.split(key, 3)
        bound = 1.0 / jnp.sqrt(jnp.float32(fi))
        # stored as [in, out] (transposed relative to torch's [out, in])
        params[f"w{idx}"] = jax.random.uniform(
            kw, (fi, fo), jnp.float32, minval=-bound, maxval=bound)
        params[f"b{idx}"] = jax.random.uniform(
            kb, (1, fo), jnp.float32, minval=-bound, maxval=bound)
    return params


def mlp_reference(x, params):
    """Pure-JAX reference using the same bf16-weight / f32-accumulate recipe."""
    def layer(h, w, b, relu=True):
        y = jnp.dot(h.astype(jnp.bfloat16), w.astype(jnp.bfloat16),
                    preferred_element_type=jnp.float32) + b
        return jnp.maximum(y, 0.0) if relu else y

    h = layer(x, params["w1"], params["b1"])
    h = layer(h, params["w2"], params["b2"])
    h = layer(h, params["w3"], params["b3"])
    return layer(h, params["w4"], params["b4"], relu=False)


if __name__ == "__main__":
    key = jax.random.PRNGKey(0)
    in_features, out_features = 32, 16

    kp, kx1, kx2 = jax.random.split(key, 3)
    params = init_params(kp, in_features, out_features)

    # Small demo batch (module-consistent shape): one 8-row tile, single step.
    x_small = jax.random.normal(kx1, (8, in_features), jnp.float32)
    y_small = mlp_forward(x_small, params)
    jax.block_until_ready(y_small)
    assert y_small.shape == (8, out_features)
    y_small_ref = mlp_reference(x_small, params)
    assert jnp.allclose(y_small, y_small_ref, atol=1e-2, rtol=1e-2), "mismatch (small)"

    # Non-divisible, larger batch: exercises the multi-step pipelined grid and
    # Pallas partial-block handling (600 rows -> 2 steps of 512, last ragged).
    x_big = jax.random.normal(kx2, (600, in_features), jnp.float32)
    y_big = mlp_forward(x_big, params)
    jax.block_until_ready(y_big)
    assert y_big.shape == (600, out_features)
    y_big_ref = mlp_reference(x_big, params)
    assert jnp.allclose(y_big, y_big_ref, atol=1e-2, rtol=1e-2), "mismatch (big)"

    print("KERNEL_OK")
</pallas_src>

<mosaic_0001>
module attributes {stable_mosaic.version = 11 : i64} {
  func.func @_mlp_kernel(%arg0: i32, %arg1: memref<8x32xf32, #tpu.memory_space<vmem>>, %arg2: memref<32x256xbf16, #tpu.memory_space<vmem>>, %arg3: memref<1x256xf32, #tpu.memory_space<vmem>>, %arg4: memref<256x512xbf16, #tpu.memory_space<vmem>>, %arg5: memref<1x512xf32, #tpu.memory_space<vmem>>, %arg6: memref<512x256xbf16, #tpu.memory_space<vmem>>, %arg7: memref<1x256xf32, #tpu.memory_space<vmem>>, %arg8: memref<256x16xbf16, #tpu.memory_space<vmem>>, %arg9: memref<1x16xf32, #tpu.memory_space<vmem>>, %arg10: memref<8x16xf32, #tpu.memory_space<vmem>>) attributes {dimension_semantics = [#tpu.dimension_semantics<parallel>], iteration_bounds = array<i64: 1>, scalar_prefetch = 0 : i64, scratch_operands = 0 : i64, tpu.core_type = #tpu.core_type<tc>, window_params = [{transform_indices = @transform_0, window_bounds = array<i64: 8, 32>}, {pipeline_mode = #tpu.pipeline_mode<synchronous>, transform_indices = @transform_1, window_bounds = array<i64: 32, 256>}, {pipeline_mode = #tpu.pipeline_mode<synchronous>, transform_indices = @transform_2, window_bounds = array<i64: 1, 256>}, {pipeline_mode = #tpu.pipeline_mode<synchronous>, transform_indices = @transform_3, window_bounds = array<i64: 256, 512>}, {pipeline_mode = #tpu.pipeline_mode<synchronous>, transform_indices = @transform_4, window_bounds = array<i64: 1, 512>}, {pipeline_mode = #tpu.pipeline_mode<synchronous>, transform_indices = @transform_5, window_bounds = array<i64: 512, 256>}, {pipeline_mode = #tpu.pipeline_mode<synchronous>, transform_indices = @transform_6, window_bounds = array<i64: 1, 256>}, {pipeline_mode = #tpu.pipeline_mode<synchronous>, transform_indices = @transform_7, window_bounds = array<i64: 256, 16>}, {pipeline_mode = #tpu.pipeline_mode<synchronous>, transform_indices = @transform_8, window_bounds = array<i64: 1, 16>}, {transform_indices = @transform_9, window_bounds = array<i64: 8, 16>}]} {
    %c0 = arith.constant 0 : index
    %c0_0 = arith.constant 0 : index
    %0 = vector.load %arg1[%c0, %c0_0] : memref<8x32xf32, #tpu.memory_space<vmem>>, vector<8x32xf32>
    %1 = arith.truncf %0 : vector<8x32xf32> to vector<8x32xbf16>
    %c0_1 = arith.constant 0 : index
    %c0_2 = arith.constant 0 : index
    %2 = vector.load %arg2[%c0_1, %c0_2] : memref<32x256xbf16, #tpu.memory_space<vmem>>, vector<32x256xbf16>
    %cst = arith.constant dense<0.000000e+00> : vector<8x256xf32>
    %3 = tpu.matmul %1, %2, %cst {dimension_numbers = #tpu.dot_dimension_numbers<[1], [0], [0], [1], [0, 0, 1, 1], [], []>} : vector<8x32xbf16>, vector<32x256xbf16>, vector<8x256xf32> -> vector<8x256xf32>
    %c0_3 = arith.constant 0 : index
    %c0_4 = arith.constant 0 : index
    %4 = vector.load %arg3[%c0_3, %c0_4] : memref<1x256xf32, #tpu.memory_space<vmem>>, vector<1x256xf32>
    %5 = vector.broadcast %4 : vector<1x256xf32> to vector<8x256xf32>
    %6 = arith.addf %3, %5 : vector<8x256xf32>
    %cst_5 = arith.constant 0.000000e+00 : f32
    %7 = vector.broadcast %cst_5 : f32 to vector<8x256xf32>
    %8 = arith.maximumf %6, %7 : vector<8x256xf32>
    %9 = arith.truncf %8 : vector<8x256xf32> to vector<8x256xbf16>
    %c0_6 = arith.constant 0 : index
    %c0_7 = arith.constant 0 : index
    %10 = vector.load %arg4[%c0_6, %c0_7] : memref<256x512xbf16, #tpu.memory_space<vmem>>, vector<256x512xbf16>
    %cst_8 = arith.constant dense<0.000000e+00> : vector<8x512xf32>
    %11 = tpu.matmul %9, %10, %cst_8 {dimension_numbers = #tpu.dot_dimension_numbers<[1], [0], [0], [1], [0, 0, 1, 1], [], []>} : vector<8x256xbf16>, vector<256x512xbf16>, vector<8x512xf32> -> vector<8x512xf32>
    %c0_9 = arith.constant 0 : index
    %c0_10 = arith.constant 0 : index
    %12 = vector.load %arg5[%c0_9, %c0_10] : memref<1x512xf32, #tpu.memory_space<vmem>>, vector<1x512xf32>
    %13 = vector.broadcast %12 : vector<1x512xf32> to vector<8x512xf32>
    %14 = arith.addf %11, %13 : vector<8x512xf32>
    %cst_11 = arith.constant 0.000000e+00 : f32
    %15 = vector.broadcast %cst_11 : f32 to vector<8x512xf32>
    %16 = arith.maximumf %14, %15 : vector<8x512xf32>
    %17 = arith.truncf %16 : vector<8x512xf32> to vector<8x512xbf16>
    %c0_12 = arith.constant 0 : index
    %c0_13 = arith.constant 0 : index
    %18 = vector.load %arg6[%c0_12, %c0_13] : memref<512x256xbf16, #tpu.memory_space<vmem>>, vector<512x256xbf16>
    %cst_14 = arith.constant dense<0.000000e+00> : vector<8x256xf32>
    %19 = tpu.matmul %17, %18, %cst_14 {dimension_numbers = #tpu.dot_dimension_numbers<[1], [0], [0], [1], [0, 0, 1, 1], [], []>} : vector<8x512xbf16>, vector<512x256xbf16>, vector<8x256xf32> -> vector<8x256xf32>
    %c0_15 = arith.constant 0 : index
    %c0_16 = arith.constant 0 : index
    %20 = vector.load %arg7[%c0_15, %c0_16] : memref<1x256xf32, #tpu.memory_space<vmem>>, vector<1x256xf32>
    %21 = vector.broadcast %20 : vector<1x256xf32> to vector<8x256xf32>
    %22 = arith.addf %19, %21 : vector<8x256xf32>
    %cst_17 = arith.constant 0.000000e+00 : f32
    %23 = vector.broadcast %cst_17 : f32 to vector<8x256xf32>
    %24 = arith.maximumf %22, %23 : vector<8x256xf32>
    %25 = arith.truncf %24 : vector<8x256xf32> to vector<8x256xbf16>
    %c0_18 = arith.constant 0 : index
    %c0_19 = arith.constant 0 : index
    %26 = vector.load %arg8[%c0_18, %c0_19] : memref<256x16xbf16, #tpu.memory_space<vmem>>, vector<256x16xbf16>
    %cst_20 = arith.constant dense<0.000000e+00> : vector<8x16xf32>
    %27 = tpu.matmul %25, %26, %cst_20 {dimension_numbers = #tpu.dot_dimension_numbers<[1], [0], [0], [1], [0, 0, 1, 1], [], []>} : vector<8x256xbf16>, vector<256x16xbf16>, vector<8x16xf32> -> vector<8x16xf32>
    %c0_21 = arith.constant 0 : index
    %c0_22 = arith.constant 0 : index
    %28 = vector.load %arg9[%c0_21, %c0_22] : memref<1x16xf32, #tpu.memory_space<vmem>>, vector<1x16xf32>
    %29 = vector.broadcast %28 : vector<1x16xf32> to vector<8x16xf32>
    %30 = arith.addf %27, %29 : vector<8x16xf32>
    %c0_23 = arith.constant 0 : index
    %c0_24 = arith.constant 0 : index
    %31 = vector.load %arg10[%c0_23, %c0_24] : memref<8x16xf32, #tpu.memory_space<vmem>>, vector<8x16xf32>
    tpu.vector_store %arg10[%c0_23, %c0_24], %30 {strides = array<i32>} : memref<8x16xf32, #tpu.memory_space<vmem>>, vector<8x16xf32>,
    return
  }
  func.func @transform_0(%arg0: i32) -> (i32, i32) {
    %c0_i32 = arith.constant 0 : i32
    %c0_i32_0 = arith.constant 0 : i32
    return %arg0, %c0_i32 : i32, i32
  }
  func.func @transform_1(%arg0: i32) -> (i32, i32) {
    %c0_i32 = arith.constant 0 : i32
    %c0_i32_0 = arith.constant 0 : i32
    %c0_i32_1 = arith.constant 0 : i32
    return %c0_i32, %c0_i32_0 : i32, i32
  }
  func.func @transform_2(%arg0: i32) -> (i32, i32) {
    %c0_i32 = arith.constant 0 : i32
    %c0_i32_0 = arith.constant 0 : i32
    %c0_i32_1 = arith.constant 0 : i32
    return %c0_i32, %c0_i32_0 : i32, i32
  }
  func.func @transform_3(%arg0: i32) -> (i32, i32) {
    %c0_i32 = arith.constant 0 : i32
    %c0_i32_0 = arith.constant 0 : i32
    %c0_i32_1 = arith.constant 0 : i32
    return %c0_i32, %c0_i32_0 : i32, i32
  }
  func.func @transform_4(%arg0: i32) -> (i32, i32) {
    %c0_i32 = arith.constant 0 : i32
    %c0_i32_0 = arith.constant 0 : i32
    %c0_i32_1 = arith.constant 0 : i32
    return %c0_i32, %c0_i32_0 : i32, i32
  }
  func.func @transform_5(%arg0: i32) -> (i32, i32) {
    %c0_i32 = arith.constant 0 : i32
    %c0_i32_0 = arith.constant 0 : i32
    %c0_i32_1 = arith.constant 0 : i32
    return %c0_i32, %c0_i32_0 : i32, i32
  }
  func.func @transform_6(%arg0: i32) -> (i32, i32) {
    %c0_i32 = arith.constant 0 : i32
    %c0_i32_0 = arith.constant 0 : i32
    %c0_i32_1 = arith.constant 0 : i32
    return %c0_i32, %c0_i32_0 : i32, i32
  }
  func.func @transform_7(%arg0: i32) -> (i32, i32) {
    %c0_i32 = arith.constant 0 : i32
    %c0_i32_0 = arith.constant 0 : i32
    %c0_i32_1 = arith.constant 0 : i32
    return %c0_i32, %c0_i32_0 : i32, i32
  }
  func.func @transform_8(%arg0: i32) -> (i32, i32) {
    %c0_i32 = arith.constant 0 : i32
    %c0_i32_0 = arith.constant 0 : i32
    %c0_i32_1 = arith.constant 0 : i32
    return %c0_i32, %c0_i32_0 : i32, i32
  }
  func.func @transform_9(%arg0: i32) -> (i32, i32) {
    %c0_i32 = arith.constant 0 : i32
    %c0_i32_0 = arith.constant 0 : i32
    return %arg0, %c0_i32 : i32, i32
  }
}

</mosaic_0001>

<bundles_post_ra>
// kernel: tpu_custom_call.1
= control target key start
LH: loop header
LB: loop body
LE: loop exit
PB: predicated region body
PF: predicated region fallthrough
CT: control target
= control target key end

     0   :  { %14 = vsyncpa [#allocation3], 0  ;;  %s1938_s0 = inlined_call_operand.vmem [shape: f32[8,32], index: 0, kind: input, shape index: {}]   ;;  %s1939_s1 = inlined_call_operand.vmem [shape: bf16[32,256], index: 1, kind: input, shape index: {}]   ;;  %s1940_s2 = inlined_call_operand.vmem [shape: f32[1,256], index: 2, kind: input, shape index: {}]   ;;  %s1941_s3 = inlined_call_operand.hbm [shape: bf16[256,512], index: 3, kind: input, shape index: {}]   ;;  %s1942_s4 = inlined_call_operand.vmem [shape: f32[1,512], index: 4, kind: input, shape index: {}]   ;;  %s1943_s5 = inlined_call_operand.hbm [shape: bf16[512,256], index: 5, kind: input, shape index: {}]   ;;  %s1944_s6 = inlined_call_operand.vmem [shape: f32[1,256], index: 6, kind: input, shape index: {}]   ;;  %s1945_s7 = inlined_call_operand.vmem [shape: bf16[256,16], index: 7, kind: input, shape index: {}]   ;;  %s1946_s8 = inlined_call_operand.vmem [shape: f32[1,16], index: 8, kind: input, shape index: {}]   ;;  %s1947_s9 = inlined_call_operand.hbm [shape: f32[8,16], index: 9, kind: output, shape index: {}]  }
   0x1   :  { %15 = vsyncpa [#allocation6], 0 }
   0x2   :  { %16 = vsyncpa [#allocation4], 0  ;;  %s1780_s30 = smov [#allocation2]  }
   0x3   :  { %s28_s10 = sshll.u32 %s1780_s30, 4  ;;  %s29_s10 = int_to_ptr.vmem [resolvable:$true] %s28_s10 }
   0x4   :  { %s1722_s11 = scalar_lea.vmem %s29_s10, 8192  ;;  %p1727_p1 = scmp.lt.s32.totalorder %s29_s10, %s29_s10 }
   0x5   :  { %p1723_p0 = scmp.ne.s32.totalorder %s29_s10, %s1722_s11  ;;  %p1728_p2 = scmp.lt.s32.totalorder %s1722_s11, %s1722_s11 }
   0x7   :  { %p1729_p3 = por %p1728_p2, %p1727_p1 }
   0x9   :  { %p1730_p4 = pnand %p1729_p3, %p1723_p0 }
   0xb   :  { %1733 = shalt.err (!%p1730_p4)
}
   0xc   :  { %s1781_s12 = smov 256   ;;  %s1782_s13 = smov 16  }
   0xd   :  { %34 = dma.hbm_to_vmem [thread:$0]  %s1941_s3, 8192, %s29_s10, [#allocation3], %s1781_s12, %s1781_s12, %s1782_s13  }
   0xe   :  { %s1783_s16 = smov [#allocation5]  }
   0xf   :  { %s42_s17 = sshll.u32 %s1783_s16, 4  ;;  %s43_s17 = int_to_ptr.vmem [resolvable:$true] %s42_s17 }
  0x10   :  { %s1742_s18 = scalar_lea.vmem %s43_s17, 8192  ;;  %p1747_p6 = scmp.lt.s32.totalorder %s43_s17, %s43_s17 }
  0x11   :  { %p1743_p5 = scmp.ne.s32.totalorder %s43_s17, %s1742_s18  ;;  %p1748_p7 = scmp.lt.s32.totalorder %s1742_s18, %s1742_s18 }
  0x13   :  { %p1749_p8 = por %p1748_p7, %p1747_p6 }
  0x15   :  { %p1750_p9 = pnand %p1749_p8, %p1743_p5 }
  0x17   :  { %1753 = shalt.err (!%p1750_p9)
}
  0x18   :  { %s1784_s19 = smov 128   ;;  %s1785_s20 = smov 8  }
  0x19   :  { %48 = dma.hbm_to_vmem [thread:$0]  %s1943_s5, 8192, %s43_s17, [#allocation6], %s1784_s19, %s1784_s19, %s1785_s20  }
  0x1a   :  { %1774 = dma.done.wait [#allocation3], 8192  }
  0x1b   :  { %1775 = vsyncadd [#allocation3], 4294959104 }
  0x1c   :  { %1776 = dma.done.wait [#allocation6], 8192  }
  0x1d   :  { %1777 = vsyncadd [#allocation6], 4294959104  ;;  %v1786_v0 = vmov 0   ;;  %v1500_v1 = vld [vmem:[%s1939_s1 + $0x14] ss:$8 sps:$4 sm:$0xff]   ;;  %v62_v5 = vld [vmem:[%s1938_s0] sm:$0xff] }
  0x1e   :  { %136 = vmatprep.mubr.bf16.mxu0 %v1786_v0  ;;  %v1502_v2 = vld [vmem:[%s1939_s1 + $0x10] ss:$8 sps:$4 sm:$0xff]   ;;  %116 = vmatprep.subr.bf16.mxu0 %v1500_v1  ;;  %v1503_v3 = vld [vmem:[%s1939_s1 + $0x4] ss:$8 sps:$4 sm:$0xff]   ;;  %v1505_v4 = vld [vmem:[%s1939_s1] ss:$8 sps:$4 sm:$0xff]   ;;  %v63_v9 = vpack.c.bf16 %v62_v5, %v62_v5 }
  0x1f   :  { %117 = vmatpush1.bf16.msra.mxu0 %v1502_v2  ;;  %v1506_v6 = vld [vmem:[#allocation2 + $0xe4] ss:$16 sps:$4 sm:$0xff]   ;;  %v1510_v7 = vld [vmem:[#allocation2 + $0xec] ss:$16 sps:$4 sm:$0xff]   ;;  %v1511_v8 = vld [vmem:[#allocation2 + $0xe0] ss:$16 sps:$4 sm:$0xff]  }
  0x20   :  { %118 = vmatprep.subr.bf16.mxu0 %v1503_v3  ;;  %555 = vmatprep.subr.bf16.mxu1 %v1506_v6  ;;  %v1512_v10 = vld [vmem:[#allocation2 + $0xc4] ss:$16 sps:$4 sm:$0xff]   ;;  %vm100_vm0 = vcmask 261120   ;;  %v1508_v11 = vld [vmem:[#allocation2 + $0xe8] ss:$16 sps:$4 sm:$0xff]   ;;  %s1787_s17 = smov [#allocation7]  }
  0x21   :  { %556 = vmatpush1.bf16.msra.mxu1 %v1511_v8  ;;  %v1516_v12 = vld [vmem:[#allocation2 + $0xcc] ss:$16 sps:$4 sm:$0xff]   ;;  %v1517_v13 = vld [vmem:[#allocation2 + $0xc0] ss:$16 sps:$4 sm:$0xff]   ;;  %v1518_v14 = vld [vmem:[#allocation2 + $0xa4] ss:$16 sps:$4 sm:$0xff]  }
  0x22   :  { %557 = vmatprep.subr.bf16.mxu1 %v1512_v10  ;;  %v1514_v15 = vld [vmem:[#allocation2 + $0xc8] ss:$16 sps:$4 sm:$0xff]   ;;  %v1522_v16 = vld [vmem:[#allocation2 + $0xac] ss:$16 sps:$4 sm:$0xff]   ;;  %v1523_v17 = vld [vmem:[#allocation2 + $0xa0] ss:$16 sps:$4 sm:$0xff]  }
  0x23   :  { %119 = vmatpush1.bf16.msra.mxu0 %v1505_v4  ;;  %v1524_v18 = vld [vmem:[#allocation2 + $0x84] ss:$16 sps:$4 sm:$0xff]   ;;  %v1520_v19 = vld [vmem:[#allocation2 + $0xa8] ss:$16 sps:$4 sm:$0xff]   ;;  %v1528_v20 = vld [vmem:[#allocation2 + $0x8c] ss:$16 sps:$4 sm:$0xff]  }
  0x24   :  { %596 = vmatprep.subr.bf16.mxu0 %v1510_v7  ;;  %v1529_v21 = vld [vmem:[#allocation2 + $0x80] ss:$16 sps:$4 sm:$0xff]   ;;  %v1530_v22 = vld [vmem:[#allocation2 + $0x64] ss:$16 sps:$4 sm:$0xff]   ;;  %v1526_v23 = vld [vmem:[#allocation2 + $0x88] ss:$16 sps:$4 sm:$0xff]  }
  0x25   :  { %558 = vmatpush1.bf16.msra.mxu1 %v1517_v13  ;;  %v1534_v24 = vld [vmem:[#allocation2 + $0x6c] ss:$16 sps:$4 sm:$0xff]   ;;  %v1535_v25 = vld [vmem:[#allocation2 + $0x60] ss:$16 sps:$4 sm:$0xff]   ;;  %v1536_v26 = vld [vmem:[#allocation2 + $0x44] ss:$16 sps:$4 sm:$0xff]  }
  0x26   :  { %1324 = vmatmul.mubr.msk.bf16.vlgmr.msra.gmra.mxu0 %vm100_vm0, %v63_v9  ;;  %559 = vmatprep.subr.bf16.mxu1 %v1518_v14  ;;  %v1532_v27 = vld [vmem:[#allocation2 + $0x68] ss:$16 sps:$4 sm:$0xff]   ;;  %v1540_v28 = vld [vmem:[#allocation2 + $0x4c] ss:$16 sps:$4 sm:$0xff]   ;;  %v1541_v29 = vld [vmem:[#allocation2 + $0x40] ss:$16 sps:$4 sm:$0xff]   ;;  %v70_v9 = vlaneseq }
  0x27   :  { %597 = vmatpush1.bf16.msra.mxu0 %v1508_v11  ;;  %v1542_v30 = vld [vmem:[#allocation2 + $0x24] ss:$16 sps:$4 sm:$0xff]   ;;  %v1538_v31 = vld [vmem:[#allocation2 + $0x48] ss:$16 sps:$4 sm:$0xff]   ;;  %v1546_v32 = vld [vmem:[#allocation2 + $0x2c] ss:$16 sps:$4 sm:$0xff]  }
  0x28   :  { %598 = vmatprep.subr.bf16.mxu0 %v1516_v12  ;;  %v1547_v33 = vld [vmem:[#allocation2 + $0x20] ss:$16 sps:$4 sm:$0xff]   ;;  %v1548_v34 = vld [vmem:[#allocation2 + $0x4] ss:$16 sps:$4 sm:$0xff]   ;;  %v1544_v35 = vld [vmem:[#allocation2 + $0x28] ss:$16 sps:$4 sm:$0xff]  }
  0x29   :  { %560 = vmatpush1.bf16.msra.mxu1 %v1523_v17  ;;  %v1552_v36 = vld [vmem:[#allocation2 + $0xc] ss:$16 sps:$4 sm:$0xff]   ;;  %v1553_v37 = vld [vmem:[#allocation2] ss:$16 sps:$4 sm:$0xff]   ;;  %v1554_v38 = vld [vmem:[#allocation2 + $0x1e4] ss:$16 sps:$4 sm:$0xff]  }
  0x2a   :  { %561 = vmatprep.subr.bf16.mxu1 %v1524_v18  ;;  %v1550_v39 = vld [vmem:[#allocation2 + $0x8] ss:$16 sps:$4 sm:$0xff]   ;;  %v1558_v40 = vld [vmem:[#allocation2 + $0x1ec] ss:$16 sps:$4 sm:$0xff]   ;;  %v1559_v41 = vld [vmem:[#allocation2 + $0x1e0] ss:$16 sps:$4 sm:$0xff]  }
  0x2b   :  { %599 = vmatpush1.bf16.msra.mxu0 %v1514_v15  ;;  %v1560_v42 = vld [vmem:[#allocation2 + $0x1c4] ss:$16 sps:$4 sm:$0xff]   ;;  %v1556_v43 = vld [vmem:[#allocation2 + $0x1e8] ss:$16 sps:$4 sm:$0xff]   ;;  %v1565_v44 = vld [vmem:[#allocation2 + $0x1c0] ss:$16 sps:$4 sm:$0xff]  }
  0x2c   :  { %600 = vmatprep.subr.bf16.mxu0 %v1522_v16  ;;  %v1564_v45 = vld [vmem:[#allocation2 + $0x1cc] ss:$16 sps:$4 sm:$0xff]   ;;  %v1566_v46 = vld [vmem:[#allocation2 + $0x1a4] ss:$16 sps:$4 sm:$0xff]   ;;  %v1562_v47 = vld [vmem:[#allocation2 + $0x1c8] ss:$16 sps:$4 sm:$0xff]  }
  0x2d   :  { %562 = vmatpush1.bf16.msra.mxu1 %v1529_v21  ;;  %v1571_v48 = vld [vmem:[#allocation2 + $0x1a0] ss:$16 sps:$4 sm:$0xff]   ;;  %v1570_v49 = vld [vmem:[#allocation2 + $0x1ac] ss:$16 sps:$4 sm:$0xff]   ;;  %v1572_v50 = vld [vmem:[#allocation2 + $0x184] ss:$16 sps:$4 sm:$0xff]  }
  0x2e   :  { %563 = vmatprep.subr.bf16.mxu1 %v1530_v22  ;;  %v1568_v51 = vld [vmem:[#allocation2 + $0x1a8] ss:$16 sps:$4 sm:$0xff]   ;;  %v1577_v52 = vld [vmem:[#allocation2 + $0x180] ss:$16 sps:$4 sm:$0xff]   ;;  %v1576_v53 = vld [vmem:[#allocation2 + $0x18c] ss:$16 sps:$4 sm:$0xff]  }
  0x2f   :  { %601 = vmatpush1.bf16.msra.mxu0 %v1520_v19  ;;  %v1578_v54 = vld [vmem:[#allocation2 + $0x164] ss:$16 sps:$4 sm:$0xff]   ;;  %v1574_v55 = vld [vmem:[#allocation2 + $0x188] ss:$16 sps:$4 sm:$0xff]   ;;  %v1583_v56 = vld [vmem:[#allocation2 + $0x160] ss:$16 sps:$4 sm:$0xff]  }
  0x30   :  { %602 = vmatprep.subr.bf16.mxu0 %v1528_v20  ;;  %v1582_v57 = vld [vmem:[#allocation2 + $0x16c] ss:$16 sps:$4 sm:$0xff]   ;;  %v1584_v58 = vld [vmem:[#allocation2 + $0x144] ss:$16 sps:$4 sm:$0xff]   ;;  %v1580_v59 = vld [vmem:[#allocation2 + $0x168] ss:$16 sps:$4 sm:$0xff]  }
  0x31   :  { %564 = vmatpush1.bf16.msra.mxu1 %v1535_v25  ;;  %v1589_v60 = vld [vmem:[#allocation2 + $0x140] ss:$16 sps:$4 sm:$0xff]   ;;  %v1588_v61 = vld [vmem:[#allocation2 + $0x14c] ss:$16 sps:$4 sm:$0xff]   ;;  %v1586_v62 = vld [vmem:[#allocation2 + $0x148] ss:$16 sps:$4 sm:$0xff]  }
  0x32   :  { %565 = vmatprep.subr.bf16.mxu1 %v1536_v26  ;;  %v1590_v63 = vld [vmem:[#allocation2 + $0x124] ss:$16 sps:$4 sm:$0xff]   ;;  %v1594_v0 = vld [vmem:[#allocation2 + $0x12c] ss:$16 sps:$4 sm:$0xff]   ;;  %v1592_v1 = vld [vmem:[#allocation2 + $0x128] ss:$16 sps:$4 sm:$0xff]  }
  0x33   :  { %603 = vmatpush1.bf16.msra.mxu0 %v1526_v23  ;;  %v1595_v2 = vld [vmem:[#allocation2 + $0x120] ss:$16 sps:$4 sm:$0xff]   ;;  %v1596_v3 = vld [vmem:[#allocation2 + $0x104] ss:$16 sps:$4 sm:$0xff]   ;;  %v1600_v4 = vld [vmem:[#allocation2 + $0x10c] ss:$16 sps:$4 sm:$0xff]  }
  0x34   :  { %604 = vmatprep.subr.bf16.mxu0 %v1534_v24  ;;  %v1598_v5 = vld [vmem:[#allocation2 + $0x108] ss:$16 sps:$4 sm:$0xff]   ;;  %v1601_v6 = vld [vmem:[#allocation2 + $0x100] ss:$16 sps:$4 sm:$0xff]   ;;  %v1604_v7 = vld [vmem:[#allocation5 + $0x74] ss:$8 sps:$4 sm:$0xff]  }
  0x35   :  { %566 = vmatpush1.bf16.msra.mxu1 %v1541_v29  ;;  %v1607_v8 = vld [vmem:[#allocation5 + $0x174] ss:$8 sps:$4 sm:$0xff]   ;;  %v1859_v10 = vshrl.u32 %v70_v9, 7  ;;  %v68_v12 = vld [vmem:[%s1940_s2] sm:$0x3]  ;;  %s1310_s18 = sshll.u32 %s1787_s17, 4  ;;  %s1311_s18 = int_to_ptr.vmem [resolvable:$true] %s1310_s18 }
  0x36   :  { %567 = vmatprep.subr.bf16.mxu1 %v1542_v30  ;;  %v1602_v25 = vld [vmem:[#allocation5 + $0x70] ss:$8 sps:$4 sm:$0xff]   ;;  %v1613_v29 = vld [vmem:[#allocation5 + $0x164] ss:$8 sps:$4 sm:$0xff]   ;;  %v1608_v30 = vld [vmem:[#allocation5 + $0x60] ss:$8 sps:$4 sm:$0xff]   ;;  %p1759_p11 = scmp.lt.s32.totalorder %s1311_s18, %s1311_s18 }
  0x37   :  { %605 = vmatpush1.bf16.msra.mxu0 %v1532_v27  ;;  %v1862_v11 = vsub.s32 0, %v1859_v10  ;;  %v1868_v13 = vsub.s32 1, %v1859_v10  ;;  %v1605_v26 = vld [vmem:[#allocation5 + $0x170] ss:$8 sps:$4 sm:$0xff]   ;;  %v1679_v9 = vld [vmem:[#allocation5 + $0x1b4] ss:$8 sps:$4 sm:$0xff]  }
  0x38   :  { %606 = vmatprep.subr.bf16.mxu0 %v1540_v28  ;;  %v1610_v28 = vld [vmem:[#allocation5 + $0x64] ss:$8 sps:$4 sm:$0xff]   ;;  %vm1302_vm1 = vcmask 130048   ;;  %s1754_s19 = scalar_lea.vmem %s1311_s18, 128 }
  0x39   :  { %568 = vmatpush1.bf16.msra.mxu1 %v1547_v33  ;;  %v73_v14 = vrot.slane %v68_v12, %v1862_v11  ;;  %v77_v15 = vrot.slane %v68_v12, %v1868_v13  ;;  %v1619_v33 = vld [vmem:[#allocation5 + $0x154] ss:$8 sps:$4 sm:$0xff]   ;;  %v1674_v12 = vld [vmem:[#allocation5 + $0xb0] ss:$8 sps:$4 sm:$0xff]   ;;  %p1755_p10 = scmp.ne.s32.totalorder %s1311_s18, %s1754_s19  ;;  %p1760_p12 = scmp.lt.s32.totalorder %s1754_s19, %s1754_s19 }
  0x3a   :  { %569 = vmatprep.subr.bf16.mxu1 %v1548_v34  ;;  %v1614_v34 = vld [vmem:[#allocation5 + $0x50] ss:$8 sps:$4 sm:$0xff]  }
  0x3b   :  { %607 = vmatpush1.bf16.msra.mxu0 %v1538_v31  ;;  %v1611_v31 = vld [vmem:[#allocation5 + $0x160] ss:$8 sps:$4 sm:$0xff]   ;;  %p1761_p13 = por %p1760_p12, %p1759_p11 }
  0x3c   :  { %608 = vmatprep.subr.bf16.mxu0 %v1546_v32  ;;  %v1616_v32 = vld [vmem:[#allocation5 + $0x54] ss:$8 sps:$4 sm:$0xff]  }
  0x3d   :  { %570 = vmatpush1.bf16.msra.mxu1 %v1553_v37  ;;  %v1625_v37 = vld [vmem:[#allocation5 + $0x144] ss:$8 sps:$4 sm:$0xff]   ;;  %p1762_p0 = pnand %p1761_p13, %p1755_p10 }
  0x3e   :  { %571 = vmatprep.subr.bf16.mxu1 %v1554_v38  ;;  %v1620_v38 = vld [vmem:[#allocation5 + $0x40] ss:$8 sps:$4 sm:$0xff]  }
  0x3f   :  { %609 = vmatpush1.bf16.msra.mxu0 %v1544_v35  ;;  %v1617_v35 = vld [vmem:[#allocation5 + $0x150] ss:$8 sps:$4 sm:$0xff]  }
  0x40   :  { %610 = vmatprep.subr.bf16.mxu0 %v1552_v36  ;;  %v1622_v36 = vld [vmem:[#allocation5 + $0x44] ss:$8 sps:$4 sm:$0xff]  }
  0x41   :  { %572 = vmatpush2.bf16.msra.mxu1 %v1559_v41  ;;  %v1631_v41 = vld [vmem:[#allocation5 + $0x134] ss:$8 sps:$4 sm:$0xff]  }
  0x42   :  { %573 = vmatprep.subr.bf16.mxu1 %v1560_v42  ;;  %v1626_v42 = vld [vmem:[#allocation5 + $0x30] ss:$8 sps:$4 sm:$0xff]  }
  0x43   :  { %611 = vmatpush1.bf16.msra.mxu0 %v1550_v39  ;;  %v1623_v39 = vld [vmem:[#allocation5 + $0x140] ss:$8 sps:$4 sm:$0xff]  }
  0x44   :  { %612 = vmatprep.subr.bf16.mxu0 %v1558_v40  ;;  %v1628_v40 = vld [vmem:[#allocation5 + $0x34] ss:$8 sps:$4 sm:$0xff]  }
  0x45   :  { %574 = vmatpush2.bf16.msra.mxu1 %v1565_v44  ;;  %v1634_v44 = vld [vmem:[#allocation5 + $0x24] ss:$8 sps:$4 sm:$0xff]  }
  0x46   :  { %575 = vmatprep.subr.bf16.mxu1 %v1566_v46  ;;  %v1632_v46 = vld [vmem:[#allocation5 + $0x20] ss:$8 sps:$4 sm:$0xff]  }
  0x47   :  { %613 = vmatpush2.bf16.msra.mxu0 %v1556_v43  ;;  %v1629_v43 = vld [vmem:[#allocation5 + $0x130] ss:$8 sps:$4 sm:$0xff]  }
  0x48   :  { %614 = vmatprep.subr.bf16.mxu0 %v1564_v45  ;;  %v1637_v45 = vld [vmem:[#allocation5 + $0x124] ss:$8 sps:$4 sm:$0xff]  }
  0x49   :  { %576 = vmatpush2.bf16.msra.mxu1 %v1571_v48  ;;  %v1640_v48 = vld [vmem:[#allocation5 + $0x14] ss:$8 sps:$4 sm:$0xff]  }
  0x4a   :  { %577 = vmatprep.subr.bf16.mxu1 %v1572_v50  ;;  %v1638_v50 = vld [vmem:[#allocation5 + $0x10] ss:$8 sps:$4 sm:$0xff]  }
  0x4b   :  { %615 = vmatpush2.bf16.msra.mxu0 %v1562_v47  ;;  %v1635_v47 = vld [vmem:[#allocation5 + $0x120] ss:$8 sps:$4 sm:$0xff]  }
  0x4c   :  { %616 = vmatprep.subr.bf16.mxu0 %v1570_v49  ;;  %v1643_v49 = vld [vmem:[#allocation5 + $0x114] ss:$8 sps:$4 sm:$0xff]  }
  0x4d   :  { %578 = vmatpush2.bf16.msra.mxu1 %v1577_v52  ;;  %v1646_v52 = vld [vmem:[#allocation5 + $0x4] ss:$8 sps:$4 sm:$0xff]  }
  0x4e   :  { %579 = vmatprep.subr.bf16.mxu1 %v1578_v54  ;;  %v1644_v54 = vld [vmem:[#allocation5] ss:$8 sps:$4 sm:$0xff]  }
  0x4f   :  { %617 = vmatpush2.bf16.msra.mxu0 %v1568_v51  ;;  %v1641_v51 = vld [vmem:[#allocation5 + $0x110] ss:$8 sps:$4 sm:$0xff]  }
  0x50   :  { %618 = vmatprep.subr.bf16.mxu0 %v1576_v53  ;;  %v1649_v53 = vld [vmem:[#allocation5 + $0x104] ss:$8 sps:$4 sm:$0xff]  }
  0x51   :  { %580 = vmatpush2.bf16.msra.mxu1 %v1583_v56  ;;  %v1652_v56 = vld [vmem:[#allocation5 + $0xf4] ss:$8 sps:$4 sm:$0xff]  }
  0x52   :  { %581 = vmatprep.subr.bf16.mxu1 %v1584_v58  ;;  %v1650_v58 = vld [vmem:[#allocation5 + $0xf0] ss:$8 sps:$4 sm:$0xff]  }
  0x53   :  { %619 = vmatpush2.bf16.msra.mxu0 %v1574_v55  ;;  %v1647_v55 = vld [vmem:[#allocation5 + $0x100] ss:$8 sps:$4 sm:$0xff]  }
  0x54   :  { %620 = vmatprep.subr.bf16.mxu0 %v1582_v57  ;;  %v1655_v57 = vld [vmem:[#allocation5 + $0x1f4] ss:$8 sps:$4 sm:$0xff]  }
  0x55   :  { %582 = vmatpush2.bf16.msra.mxu1 %v1589_v60  ;;  %v1658_v60 = vld [vmem:[#allocation5 + $0xe4] ss:$8 sps:$4 sm:$0xff]  }
  0x56   :  { %583 = vmatprep.subr.bf16.mxu1 %v1590_v63  ;;  %v1659_v63 = vld [vmem:[#allocation5 + $0x1e0] ss:$8 sps:$4 sm:$0xff]  }
  0x57   :  { %621 = vmatpush2.bf16.msra.mxu0 %v1580_v59  ;;  %v1653_v59 = vld [vmem:[#allocation5 + $0x1f0] ss:$8 sps:$4 sm:$0xff]  }
  0x58   :  { %622 = vmatprep.subr.bf16.mxu0 %v1588_v61  ;;  %v1661_v61 = vld [vmem:[#allocation5 + $0x1e4] ss:$8 sps:$4 sm:$0xff]  }
  0x59   :  { %584 = vmatpush2.bf16.msra.mxu1 %v1595_v2  ;;  %v1662_v2 = vld [vmem:[#allocation5 + $0xd0] ss:$8 sps:$4 sm:$0xff]  }
  0x5a   :  { %585 = vmatprep.subr.bf16.mxu1 %v1596_v3  ;;  %v1665_v3 = vld [vmem:[#allocation5 + $0x1d0] ss:$8 sps:$4 sm:$0xff]  }
  0x5b   :  { %623 = vmatpush2.bf16.msra.mxu0 %v1586_v62  ;;  %v1656_v62 = vld [vmem:[#allocation5 + $0xe0] ss:$8 sps:$4 sm:$0xff]  }
  0x5c   :  { %624 = vmatprep.subr.bf16.mxu0 %v1594_v0  ;;  %v1664_v0 = vld [vmem:[#allocation5 + $0xd4] ss:$8 sps:$4 sm:$0xff]  }
  0x5d   :  { %586 = vmatpush2.bf16.msra.mxu1 %v1601_v6  ;;  %v1668_v6 = vld [vmem:[#allocation5 + $0xc0] ss:$8 sps:$4 sm:$0xff]  }
  0x5e   :  { %1041 = vmatprep.subr.bf16.mxu1 %v1604_v7  ;;  %v1671_v7 = vld [vmem:[#allocation5 + $0x1c0] ss:$8 sps:$4 sm:$0xff]  }
  0x5f   :  { %625 = vmatpush2.bf16.msra.mxu0 %v1592_v1  ;;  %v1667_v1 = vld [vmem:[#allocation5 + $0x1d4] ss:$8 sps:$4 sm:$0xff]  }
  0x60   :  { %626 = vmatprep.subr.bf16.mxu0 %v1600_v4  ;;  %v1670_v4 = vld [vmem:[#allocation5 + $0xc4] ss:$8 sps:$4 sm:$0xff]  }
  0x63   :  { %627 = vmatpush2.bf16.msra.mxu0 %v1598_v5  ;;  %v1673_v5 = vld [vmem:[#allocation5 + $0x1c4] ss:$8 sps:$4 sm:$0xff]  }
  0x64   :  { %1082 = vmatprep.subr.bf16.mxu0 %v1607_v8  ;;  %v1676_v8 = vld [vmem:[#allocation5 + $0xb4] ss:$8 sps:$4 sm:$0xff]  }
  0xe6   :  { %v138_v16 = vpop.f32.mrf.mxu0 }
  0xe7   :  { %v139_v17 = vadd.f32 %v138_v16, %v73_v14  ;;  %v1677_v14 = vld [vmem:[#allocation5 + $0x1b0] ss:$8 sps:$4 sm:$0xff]   ;;  %v1685_v16 = vld [vmem:[#allocation5 + $0x1a4] ss:$8 sps:$4 sm:$0xff]  }
  0xe8   :  { %v140_v18 = vpop.f32.mrf.mxu0 }
  0xe9   :  { %v141_v19 = vadd.f32 %v140_v18, %v77_v15  ;;  %v145_v20 = vmax.f32 %v139_v17, 0.0  ;;  %v1682_v15 = vld [vmem:[#allocation5 + $0xa4] ss:$8 sps:$4 sm:$0xff]   ;;  %v1680_v17 = vld [vmem:[#allocation5 + $0xa0] ss:$8 sps:$4 sm:$0xff]  }
  0xea   :  { %v142_v21 = vpop.f32.mrf.mxu0  ;;  %v1683_v18 = vld [vmem:[#allocation5 + $0x1a0] ss:$8 sps:$4 sm:$0xff]  }
  0xeb   :  { %v146_v22 = vmax.f32 %v141_v19, 0.0  ;;  %v147_v27 = vpack.c.bf16 %v145_v20, %v145_v20  ;;  %v1688_v19 = vld [vmem:[#allocation5 + $0x94] ss:$8 sps:$4 sm:$0xff]   ;;  %v1686_v21 = vld [vmem:[#allocation5 + $0x90] ss:$8 sps:$4 sm:$0xff]  }
  0xec   :  { %v143_v23 = vpop.f32.mrf.mxu0  ;;  %v1691_v20 = vld [vmem:[#allocation5 + $0x194] ss:$8 sps:$4 sm:$0xff]  }
  0xed   :  { %v148_v24 = vpack.c.bf16 %v146_v22, %v146_v22  ;;  %v1689_v22 = vld [vmem:[#allocation5 + $0x190] ss:$8 sps:$4 sm:$0xff]   ;;  %v1694_v23 = vld [vmem:[#allocation5 + $0x84] ss:$8 sps:$4 sm:$0xff]  }
  0xef   :  { %587 = vmatprep.mubr.bf16.mxu1 %v148_v24  ;;  %628 = vmatprep.mubr.bf16.mxu0 %v148_v24  ;;  %v1697_v24 = vld [vmem:[#allocation5 + $0x184] ss:$8 sps:$4 sm:$0xff]  }
  0xf0   :  { %588 = vmatmul.mubr.bf16.vlgmr.msra.gmra.mxu1 %v147_v27  ;;  %629 = vmatmul.mubr.bf16.vlgmr.msra.gmra.mxu0 %v147_v27  ;;  %v1698_v27 = vld [vmem:[%s1945_s7 + $0x78] sm:$0xff]  }
  0xf1   :  { %1042 = vmatpush1.bf16.msra.mxu1 %v1602_v25  ;;  %1083 = vmatpush1.bf16.msra.mxu0 %v1605_v26  ;;  %v1692_v25 = vld [vmem:[#allocation5 + $0x80] ss:$8 sps:$4 sm:$0xff]  }
  0xf2   :  { %1043 = vmatprep.subr.bf16.mxu1 %v1610_v28  ;;  %1084 = vmatprep.subr.bf16.mxu0 %v1613_v29  ;;  %v1695_v26 = vld [vmem:[#allocation5 + $0x180] ss:$8 sps:$4 sm:$0xff]   ;;  %v225_v28 = vsub.s32 2, %v1859_v10 }
  0xf3   :  { %v213_v29 = vld [vmem:[%s1942_s4] sm:$0xf] }
  0xf5   :  { %1044 = vmatpush1.bf16.msra.mxu1 %v1608_v30  ;;  %1085 = vmatpush1.bf16.msra.mxu0 %v1611_v31  ;;  %v229_v30 = vsub.s32 3, %v1859_v10  ;;  %v218_v31 = vrot.slane %v213_v29, %v1862_v11 }
  0xf6   :  { %1045 = vmatprep.subr.bf16.mxu1 %v1616_v32  ;;  %1086 = vmatprep.subr.bf16.mxu0 %v1619_v33  ;;  %v226_v32 = vrot.slane %v213_v29, %v225_v28  ;;  %v222_v33 = vrot.slane %v213_v29, %v1868_v13 }
  0xf9   :  { %1046 = vmatpush1.bf16.msra.mxu1 %v1614_v34  ;;  %1087 = vmatpush1.bf16.msra.mxu0 %v1617_v35  ;;  %v230_v34 = vrot.slane %v213_v29, %v229_v30 }
  0xfa   :  { %1047 = vmatprep.subr.bf16.mxu1 %v1622_v36  ;;  %1088 = vmatprep.subr.bf16.mxu0 %v1625_v37 }
  0xfd   :  { %1048 = vmatpush1.bf16.msra.mxu1 %v1620_v38  ;;  %1089 = vmatpush1.bf16.msra.mxu0 %v1623_v39 }
  0xfe   :  { %1049 = vmatprep.subr.bf16.mxu1 %v1628_v40  ;;  %1090 = vmatprep.subr.bf16.mxu0 %v1631_v41 }
 0x101   :  { %1050 = vmatpush1.bf16.msra.mxu1 %v1626_v42  ;;  %1091 = vmatpush1.bf16.msra.mxu0 %v1629_v43 }
 0x102   :  { %1051 = vmatprep.subr.bf16.mxu1 %v1634_v44  ;;  %1092 = vmatprep.subr.bf16.mxu0 %v1637_v45 }
 0x105   :  { %1052 = vmatpush1.bf16.msra.mxu1 %v1632_v46  ;;  %1093 = vmatpush1.bf16.msra.mxu0 %v1635_v47 }
 0x106   :  { %1053 = vmatprep.subr.bf16.mxu1 %v1640_v48  ;;  %1094 = vmatprep.subr.bf16.mxu0 %v1643_v49 }
 0x109   :  { %1054 = vmatpush1.bf16.msra.mxu1 %v1638_v50  ;;  %1095 = vmatpush1.bf16.msra.mxu0 %v1641_v51 }
 0x10a   :  { %1055 = vmatprep.subr.bf16.mxu1 %v1646_v52  ;;  %1096 = vmatprep.subr.bf16.mxu0 %v1649_v53  ;;  %v1699_v52 = vld [vmem:[%s1945_s7 + $0x38] sm:$0xff]  }
 0x10d   :  { %1056 = vmatpush1.bf16.msra.mxu1 %v1644_v54  ;;  %1097 = vmatpush1.bf16.msra.mxu0 %v1647_v55  ;;  %v1700_v55 = vld [vmem:[%s1945_s7 + $0x70] sm:$0xff]  }
 0x10e   :  { %1057 = vmatprep.subr.bf16.mxu1 %v1652_v56  ;;  %1098 = vmatprep.subr.bf16.mxu0 %v1655_v57  ;;  %v1701_v56 = vld [vmem:[%s1945_s7 + $0x30] sm:$0xff]   ;;  %v1702_v57 = vld [vmem:[%s1945_s7 + $0x68] sm:$0xff]  }
 0x111   :  { %1058 = vmatpush2.bf16.msra.mxu1 %v1650_v58  ;;  %1099 = vmatpush2.bf16.msra.mxu0 %v1653_v59  ;;  %v1703_v58 = vld [vmem:[%s1945_s7 + $0x28] sm:$0xff]   ;;  %v1704_v59 = vld [vmem:[%s1945_s7 + $0x60] sm:$0xff]  }
 0x112   :  { %1059 = vmatprep.subr.bf16.mxu1 %v1658_v60  ;;  %1100 = vmatprep.subr.bf16.mxu0 %v1661_v61  ;;  %v1705_v60 = vld [vmem:[%s1945_s7 + $0x20] sm:$0xff]   ;;  %v1706_v61 = vld [vmem:[%s1945_s7 + $0x58] sm:$0xff]  }
 0x115   :  { %1060 = vmatpush2.bf16.msra.mxu1 %v1656_v62  ;;  %1101 = vmatpush2.bf16.msra.mxu0 %v1659_v63  ;;  %v1707_v62 = vld [vmem:[%s1945_s7 + $0x18] sm:$0xff]   ;;  %v1708_v63 = vld [vmem:[%s1945_s7 + $0x50] sm:$0xff]  }
 0x116   :  { %1061 = vmatprep.subr.bf16.mxu1 %v1664_v0  ;;  %1102 = vmatprep.subr.bf16.mxu0 %v1667_v1  ;;  %v1709_v0 = vld [vmem:[%s1945_s7 + $0x10] sm:$0xff]   ;;  %v1710_v1 = vld [vmem:[%s1945_s7 + $0x48] sm:$0xff]  }
 0x119   :  { %1062 = vmatpush2.bf16.msra.mxu1 %v1662_v2  ;;  %1103 = vmatpush2.bf16.msra.mxu0 %v1665_v3  ;;  %v1711_v2 = vld [vmem:[%s1945_s7 + $0x8] sm:$0xff]   ;;  %v1712_v3 = vld [vmem:[%s1945_s7 + $0x40] sm:$0xff]  }
 0x11a   :  { %1063 = vmatprep.subr.bf16.mxu1 %v1670_v4  ;;  %1104 = vmatprep.subr.bf16.mxu0 %v1673_v5  ;;  %v1713_v4 = vld [vmem:[%s1945_s7] sm:$0xff]  }
 0x11b   :  { %v709_v5 = vld [vmem:[%s1944_s6] sm:$0x3] }
 0x11d   :  { %1064 = vmatpush2.bf16.msra.mxu1 %v1668_v6  ;;  %1105 = vmatpush2.bf16.msra.mxu0 %v1671_v7  ;;  %v714_v6 = vrot.slane %v709_v5, %v1862_v11  ;;  %v718_v7 = vrot.slane %v709_v5, %v1868_v13  ;;  %v1453_v13 = vld [vmem:[%s1946_s8] ss:$0 sm:$0xff] }
 0x11e   :  { %1065 = vmatprep.subr.bf16.mxu1 %v1676_v8  ;;  %1106 = vmatprep.subr.bf16.mxu0 %v1679_v9 }
 0x121   :  { %1066 = vmatpush2.bf16.msra.mxu1 %v1674_v12  ;;  %1107 = vmatpush2.bf16.msra.mxu0 %v1677_v14 }
 0x122   :  { %1067 = vmatprep.subr.bf16.mxu1 %v1682_v15  ;;  %1108 = vmatprep.subr.bf16.mxu0 %v1685_v16 }
 0x125   :  { %1068 = vmatpush2.bf16.msra.mxu1 %v1680_v17  ;;  %1109 = vmatpush2.bf16.msra.mxu0 %v1683_v18 }
 0x126   :  { %1069 = vmatprep.subr.bf16.mxu1 %v1688_v19  ;;  %1110 = vmatprep.subr.bf16.mxu0 %v1691_v20 }
 0x129   :  { %1070 = vmatpush2.bf16.msra.mxu1 %v1686_v21  ;;  %1111 = vmatpush2.bf16.msra.mxu0 %v1689_v22 }
 0x12a   :  { %1071 = vmatprep.subr.bf16.mxu1 %v1694_v23  ;;  %1112 = vmatprep.subr.bf16.mxu0 %v1697_v24 }
 0x12d   :  { %1072 = vmatpush2.bf16.msra.mxu1 %v1692_v25  ;;  %1113 = vmatpush2.bf16.msra.mxu0 %v1695_v26 }
 0x12e   :  { %1470 = vmatprep.subr.bf16.mxu1 %v1698_v27 }
 0x1b0   :  { %v589_v35 = vpop.f32.mrf.mxu1  ;;  %v630_v36 = vpop.f32.mrf.mxu0 }
 0x1b1   :  { %v590_v37 = vadd.f32 %v589_v35, %v218_v31  ;;  %v631_v38 = vadd.f32 %v630_v36, %v226_v32 }
 0x1b2   :  { %v591_v39 = vpop.f32.mrf.mxu1  ;;  %v632_v40 = vpop.f32.mrf.mxu0 }
 0x1b3   :  { %v592_v41 = vadd.f32 %v591_v39, %v222_v33  ;;  %v633_v42 = vadd.f32 %v632_v40, %v230_v34  ;;  %v637_v43 = vmax.f32 %v590_v37, 0.0  ;;  %v639_v44 = vmax.f32 %v631_v38, 0.0 }
 0x1b4   :  { %v593_v45 = vpop.f32.mrf.mxu1  ;;  %v634_v46 = vpop.f32.mrf.mxu0 }
 0x1b5   :  { %v638_v47 = vmax.f32 %v592_v41, 0.0  ;;  %v640_v10 = vmax.f32 %v633_v42, 0.0  ;;  %v641_v53 = vpack.c.bf16 %v637_v43, %v637_v43  ;;  %v643_v54 = vpack.c.bf16 %v639_v44, %v639_v44 }
 0x1b6   :  { %v594_v48 = vpop.f32.mrf.mxu1  ;;  %v635_v49 = vpop.f32.mrf.mxu0 }
 0x1b7   :  { %v642_v50 = vpack.c.bf16 %v638_v47, %v638_v47  ;;  %v644_v51 = vpack.c.bf16 %v640_v10, %v640_v10 }
 0x1b9   :  { %1073 = vmatprep.mubr.bf16.mxu1 %v642_v50  ;;  %1114 = vmatprep.mubr.bf16.mxu0 %v644_v51 }
 0x1ba   :  { %1074 = vmatmul.mubr.bf16.vlgmr.msra.gmra.mxu1 %v641_v53  ;;  %1115 = vmatmul.mubr.bf16.vlgmr.msra.gmra.mxu0 %v643_v54 }
 0x1bb   :  { %1471 = vmatpush3.bf16.msra.mxu1 %v1699_v52 }
 0x1bc   :  { %1472 = vmatprep.subr.bf16.mxu1 %v1700_v55 }
 0x1bf   :  { %1473 = vmatpush3.bf16.msra.mxu1 %v1701_v56 }
 0x1c0   :  { %1474 = vmatprep.subr.bf16.mxu1 %v1702_v57 }
 0x1c3   :  { %1475 = vmatpush3.bf16.msra.mxu1 %v1703_v58 }
 0x1c4   :  { %1476 = vmatprep.subr.bf16.mxu1 %v1704_v59 }
 0x1c7   :  { %1477 = vmatpush3.bf16.msra.mxu1 %v1705_v60 }
 0x1c8   :  { %1478 = vmatprep.subr.bf16.mxu1 %v1706_v61 }
 0x1cb   :  { %1479 = vmatpush3.bf16.msra.mxu1 %v1707_v62 }
 0x1cc   :  { %1480 = vmatprep.subr.bf16.mxu1 %v1708_v63 }
 0x1cf   :  { %1481 = vmatpush3.bf16.msra.mxu1 %v1709_v0 }
 0x1d0   :  { %1482 = vmatprep.subr.bf16.mxu1 %v1710_v1 }
 0x1d3   :  { %1483 = vmatpush3.bf16.msra.mxu1 %v1711_v2 }
 0x1d4   :  { %1484 = vmatprep.subr.bf16.mxu1 %v1712_v3 }
 0x1d7   :  { %1485 = vmatpush3.bf16.msra.mxu1 %v1713_v4 }
 0x27a   :  { %v1075_v8 = vpop.f32.mrf.mxu1  ;;  %v1116_v9 = vpop.f32.mrf.mxu0 }
 0x27b   :  { %v1076_v12 = vadd.f32 %v1075_v8, %v714_v6 }
 0x27c   :  { %v1077_v14 = vpop.f32.mrf.mxu1  ;;  %v1118_v15 = vpop.f32.mrf.mxu0 }
 0x27d   :  { %v1117_v16 = vadd.f32 %v1116_v9, %v1076_v12  ;;  %v1078_v17 = vadd.f32 %v1077_v14, %v718_v7 }
 0x27e   :  { %v1079_v18 = vpop.f32.mrf.mxu1  ;;  %v1120_v19 = vpop.f32.mrf.mxu0 }
 0x27f   :  { %v1119_v20 = vadd.f32 %v1118_v15, %v1078_v17  ;;  %v1123_v21 = vmax.f32 %v1117_v16, 0.0 }
 0x280   :  { %v1080_v22 = vpop.f32.mrf.mxu1  ;;  %v1121_v23 = vpop.f32.mrf.mxu0 }
 0x281   :  { %v1124_v24 = vmax.f32 %v1119_v20, 0.0  ;;  %v1125_v26 = vpack.c.bf16 %v1123_v21, %v1123_v21 }
 0x283   :  { %v1126_v25 = vpack.c.bf16 %v1124_v24, %v1124_v24 }
 0x285   :  { %1294 = vmatprep.mubr.bf16.mxu1 %v1126_v25 }
 0x286   :  { %1295 = vmatmul.mubr.bf16.vlgmr.msra.gmra.mxu1 %v1125_v26 }
 0x346   :  { %v1486_v11 = vpop.f32.mrf.mxu1 }
 0x348   :  { %v1487_v27 = vpop.f32.mrf.mxu1 }
 0x349   :  { %v1488_v28 = vadd.f32 %v1487_v27, %v1486_v11 }
 0x34a   :  { %v1489_v29 = vpop.f32.mrf.mxu1 }
 0x34b   :  { %v1297_v30 = vadd.f32 %v1488_v28, %v1453_v13 }
 0x34c   :  { %v1490_v31 = vpop.f32.mrf.mxu1 }
 0x34d   :  { %1303 = vst.msk [vmem:[#allocation7] sm:$0xff] %vm1302_vm1, %v1297_v30 }
 0x34e   :  { %1765 = shalt.err (!%p1762_p0)
}
 0x34f   :  { %1313 = dma.vmem_to_hbm [thread:$0]  %s1311_s18, 128, %s1947_s9, [#allocation4]  }
 0x350   :  { %1778 = dma.done.wait [#allocation4], 128  }
 0x351   :  { %1779 = vsyncadd [#allocation4], 4294967168 }
 0x352   :  { %1317 = vsyncpa [#allocation3], 1 }
 0x353   :  { %1318 = vsyncpa [#allocation6], 1 }
 0x354   :  { %1319 = vsyncpa [#allocation4], 1 }

</bundles_post_ra>
